<compile_context>
chip_gen: v6e
topology: v6e:2x2x1
jax: 0.10.0
libtpu: 0.0.40
codegen_flags: <defaults>
</compile_context>

<pallas_src>
import jax
import jax.numpy as jnp
from jax.experimental import pallas as pl
from jax.experimental.pallas import tpu as pltpu


# ----------------------------- Pallas kernel --------------------------------

def make_resnet_kernel(K, L, block_cfgs):
    """block_cfgs: tuple of (c_in, c_out, dilation, has_downsample)."""

    def dilated_causal_conv(x_bf, w, b, dilation):
        # x_bf: (C, L) bf16, w: (C_out, K*C) bf16 (im2col layout), b: (C_out, 1) f32
        C = x_bf.shape[0]
        pad = (K - 1) * dilation
        xp = jnp.concatenate(
            [jnp.zeros((C, pad), x_bf.dtype), x_bf], axis=1)          # (C, L+pad)
        # im2col slab: row k*C + ci, col t  ==  xp[ci, t + k*dilation]
        slab = jnp.concatenate(
            [xp[:, j * dilation: j * dilation + L] for j in range(K)], axis=0)
        y = jnp.dot(w, slab, preferred_element_type=jnp.float32)      # (C_out, L) f32
        return y + b                                                   # bias broadcast

    def kernel(*refs):
        x_ref = refs[0]
        out_ref = refs[-1]
        w_refs = refs[1:-1]

        x_bf = x_ref[...]                                              # (C_in0, L) bf16
        idx = 0
        n_blocks = len(block_cfgs)
        for bi, (c_in, c_out, dilation, has_ds) in enumerate(block_cfgs):
            w1 = w_refs[idx][...]
            b1 = w_refs[idx + 1][...]
            w2 = w_refs[idx + 2][...]
            b2 = w_refs[idx + 3][...]
            idx += 4

            h = jnp.maximum(dilated_causal_conv(x_bf, w1, b1, dilation), 0.0)
            # TODO(synk): nn.Dropout is stochastic only in train mode; identity here.
            h2 = jnp.maximum(
                dilated_causal_conv(h.astype(jnp.bfloat16), w2, b2, dilation), 0.0)

            if has_ds:
                wd = w_refs[idx][...]
                bd = w_refs[idx + 1][...]
                idx += 2
                res = jnp.dot(wd, x_bf, preferred_element_type=jnp.float32) + bd
            else:
                res = x_bf.astype(jnp.float32)                         # identity skip

            o = jnp.maximum(h2 + res, 0.0)                             # (C_out, L) f32
            if bi + 1 < n_blocks:
                x_bf = o.astype(jnp.bfloat16)
            else:
                out_ref[...] = o

    return kernel


# ----------------------------- network wrapper ------------------------------

def resnet_forward(x_ncl, params, kernel_size):
    N, C_in0, L = x_ncl.shape
    K = kernel_size

    block_cfgs = []
    in_arrays = [x_ncl.astype(jnp.bfloat16)]
    in_specs = [pl.BlockSpec((pl.Squeezed(), C_in0, L), lambda n: (n, 0, 0))]

    def full2d(shape):
        # Weight/bias BlockSpec: full array, constant across the grid.
        return pl.BlockSpec(shape, lambda n: (0, 0))

    for i, p in enumerate(params):
        c_out, kc_in = p["w1"].shape
        c_in = kc_in // K
        has_ds = "wd" in p
        block_cfgs.append((c_in, c_out, 2 ** i, has_ds))

        in_arrays += [p["w1"], p["b1"], p["w2"], p["b2"]]
        in_specs += [full2d(p["w1"].shape), full2d(p["b1"].shape),
                     full2d(p["w2"].shape), full2d(p["b2"].shape)]
        if has_ds:
            in_arrays += [p["wd"], p["bd"]]
            in_specs += [full2d(p["wd"].shape), full2d(p["bd"].shape)]

    C_last = block_cfgs[-1][1]
    kernel = make_resnet_kernel(K, L, tuple(block_cfgs))

    out = pl.pallas_call(
        kernel,
        out_shape=jax.ShapeDtypeStruct((N, C_last, L), jnp.float32),
        grid_spec=pltpu.PrefetchScalarGridSpec(
            num_scalar_prefetch=0,
            grid=(N,),
            in_specs=in_specs,
            out_specs=pl.BlockSpec((pl.Squeezed(), C_last, L), lambda n: (n, 0, 0)),
        ),
        compiler_params=pltpu.CompilerParams(
            dimension_semantics=("parallel",)),
    )(*in_arrays)

    # Output is already NCL -> Flatten matches torch's (N, C*L) ordering.
    return out.reshape(N, C_last * L)


# --------------------------- parameter init ---------------------------------

def weight_norm_effective(v, g):
    # PyTorch weight_norm (dim=0): w = g * v / ||v||, norm over (in, kernel)
    norm = jnp.sqrt(jnp.sum(v * v, axis=(1, 2), keepdims=True))
    return g[:, None, None] * v / norm


def init_resnet_params(key, num_inputs, num_channels, kernel_size):
    K = kernel_size
    params = []
    for i, c_out in enumerate(num_channels):
        c_in = num_inputs if i == 0 else num_channels[i - 1]
        key, *ks = jax.random.split(key, 9)
        v1 = 0.01 * jax.random.normal(ks[0], (c_out, c_in, K), jnp.float32)
        g1 = 0.5 + jax.random.uniform(ks[1], (c_out,), dtype=jnp.float32)
        b1 = 0.1 * jax.random.normal(ks[2], (c_out,), jnp.float32)
        v2 = 0.01 * jax.random.normal(ks[3], (c_out, c_out, K), jnp.float32)
        g2 = 0.5 + jax.random.uniform(ks[4], (c_out,), dtype=jnp.float32)
        b2 = 0.1 * jax.random.normal(ks[5], (c_out,), jnp.float32)
        w1 = weight_norm_effective(v1, g1)           # (C_out, C_in, K) torch layout
        w2 = weight_norm_effective(v2, g2)
        p = {
            # torch-layout f32 copies for the pure-JAX reference
            "w1_t": w1, "b1_t": b1, "w2_t": w2, "b2_t": b2,
            # kernel layout: im2col (C_out, K*C_in) in bf16; biases (C_out, 1) f32
            "w1": jnp.transpose(w1, (0, 2, 1)).reshape(c_out, K * c_in)
                    .astype(jnp.bfloat16),
            "b1": b1.reshape(c_out, 1),
            "w2": jnp.transpose(w2, (0, 2, 1)).reshape(c_out, K * c_out)
                    .astype(jnp.bfloat16),
            "b2": b2.reshape(c_out, 1),
        }
        if c_in != c_out:
            wd = 0.01 * jax.random.normal(ks[6], (c_out, c_in, 1), jnp.float32)
            bd = 0.1 * jax.random.normal(ks[7], (c_out,), jnp.float32)
            p["wd_t"] = wd
            p["bd_t"] = bd
            p["wd"] = wd[:, :, 0].astype(jnp.bfloat16)    # (C_out, C_in)
            p["bd"] = bd.reshape(c_out, 1)
        params.append(p)
    return params


# --------------------------- pure-JAX reference ------------------------------
# Mirrors the kernel's numerics exactly (same bf16 cast points, f32 accumulate),
# differing only in summation order.

def _ref_causal_conv(x_bf, w_t, b, dilation, pad):
    y = jax.lax.conv_general_dilated(
        x_bf, w_t.astype(jnp.bfloat16), window_strides=(1,),
        padding=[(pad, 0)], rhs_dilation=(dilation,),
        dimension_numbers=("NCH", "OIH", "NCH"),
        preferred_element_type=jnp.float32)
    return y + b[None, :, None]


def ref_resnet_forward(x_ncl, params, kernel_size):
    K = kernel_size
    x_bf = x_ncl.astype(jnp.bfloat16)
    out_f32 = None
    for i, p in enumerate(params):
        d = 2 ** i
        pad = (K - 1) * d
        h = jax.nn.relu(_ref_causal_conv(x_bf, p["w1_t"], p["b1_t"], d, pad))
        h2 = jax.nn.relu(
            _ref_causal_conv(h.astype(jnp.bfloat16), p["w2_t"], p["b2_t"], d, pad))
        if "wd_t" in p:
            res = jax.lax.conv_general_dilated(
                x_bf, p["wd_t"].astype(jnp.bfloat16), (1,), [(0, 0)],
                dimension_numbers=("NCH", "OIH", "NCH"),
                preferred_element_type=jnp.float32) + p["bd_t"][None, :, None]
        else:
            res = x_bf.astype(jnp.float32)
        out_f32 = jax.nn.relu(h2 + res)
        x_bf = out_f32.astype(jnp.bfloat16)
    return out_f32.reshape(out_f32.shape[0], -1)


# --------------------------------- main --------------------------------------

if __name__ == "__main__":
    key = jax.random.PRNGKey(0)
    N, C_in, L = 2, 4, 16
    num_channels = [8, 8]
    kernel_size = 3

    kx, kp = jax.random.split(key)
    x = jax.random.normal(kx, (N, C_in, L), jnp.float32)
    params = init_resnet_params(kp, C_in, num_channels, kernel_size)

    out = resnet_forward(x, params, kernel_size)
    out = jax.block_until_ready(out)

    ref = ref_resnet_forward(x, params, kernel_size)
    assert out.shape == (N, num_channels[-1] * L), out.shape
    assert jnp.allclose(out, ref, rtol=1e-3, atol=1e-4), float(
        jnp.max(jnp.abs(out - ref)))
    print("KERNEL_OK")
</pallas_src>

<mosaic_0001>
module attributes {stable_mosaic.version = 11 : i64} {
  func.func @kernel(%arg0: i32, %arg1: memref<1x4x16xbf16, #tpu.memory_space<vmem>>, %arg2: memref<8x12xbf16, #tpu.memory_space<vmem>>, %arg3: memref<8x1xf32, #tpu.memory_space<vmem>>, %arg4: memref<8x24xbf16, #tpu.memory_space<vmem>>, %arg5: memref<8x1xf32, #tpu.memory_space<vmem>>, %arg6: memref<8x4xbf16, #tpu.memory_space<vmem>>, %arg7: memref<8x1xf32, #tpu.memory_space<vmem>>, %arg8: memref<8x24xbf16, #tpu.memory_space<vmem>>, %arg9: memref<8x1xf32, #tpu.memory_space<vmem>>, %arg10: memref<8x24xbf16, #tpu.memory_space<vmem>>, %arg11: memref<8x1xf32, #tpu.memory_space<vmem>>, %arg12: memref<1x8x16xf32, #tpu.memory_space<vmem>>) attributes {dimension_semantics = [#tpu.dimension_semantics<parallel>], iteration_bounds = array<i64: 2>, scalar_prefetch = 0 : i64, scratch_operands = 0 : i64, tpu.core_type = #tpu.core_type<tc>, window_params = [{transform_indices = @transform_0, window_bounds = array<i64: 1, 4, 16>}, {pipeline_mode = #tpu.pipeline_mode<synchronous>, transform_indices = @transform_1, window_bounds = array<i64: 8, 12>}, {pipeline_mode = #tpu.pipeline_mode<synchronous>, transform_indices = @transform_2, window_bounds = array<i64: 8, 1>}, {pipeline_mode = #tpu.pipeline_mode<synchronous>, transform_indices = @transform_3, window_bounds = array<i64: 8, 24>}, {pipeline_mode = #tpu.pipeline_mode<synchronous>, transform_indices = @transform_4, window_bounds = array<i64: 8, 1>}, {pipeline_mode = #tpu.pipeline_mode<synchronous>, transform_indices = @transform_5, window_bounds = array<i64: 8, 4>}, {pipeline_mode = #tpu.pipeline_mode<synchronous>, transform_indices = @transform_6, window_bounds = array<i64: 8, 1>}, {pipeline_mode = #tpu.pipeline_mode<synchronous>, transform_indices = @transform_7, window_bounds = array<i64: 8, 24>}, {pipeline_mode = #tpu.pipeline_mode<synchronous>, transform_indices = @transform_8, window_bounds = array<i64: 8, 1>}, {pipeline_mode = #tpu.pipeline_mode<synchronous>, transform_indices = @transform_9, window_bounds = array<i64: 8, 24>}, {pipeline_mode = #tpu.pipeline_mode<synchronous>, transform_indices = @transform_10, window_bounds = array<i64: 8, 1>}, {transform_indices = @transform_11, window_bounds = array<i64: 1, 8, 16>}]} {
    %c0 = arith.constant 0 : index
    %c0_0 = arith.constant 0 : index
    %c0_1 = arith.constant 0 : index
    %0 = vector.load %arg1[%c0, %c0_0, %c0_1] : memref<1x4x16xbf16, #tpu.memory_space<vmem>>, vector<1x4x16xbf16>
    %1 = vector.shape_cast %0 : vector<1x4x16xbf16> to vector<4x16xbf16>
    %c0_2 = arith.constant 0 : index
    %c0_3 = arith.constant 0 : index
    %2 = vector.load %arg2[%c0_2, %c0_3] : memref<8x12xbf16, #tpu.memory_space<vmem>>, vector<8x12xbf16>
    %c0_4 = arith.constant 0 : index
    %c0_5 = arith.constant 0 : index
    %3 = vector.load %arg3[%c0_4, %c0_5] : memref<8x1xf32, #tpu.memory_space<vmem>>, vector<8x1xf32>
    %c0_6 = arith.constant 0 : index
    %c0_7 = arith.constant 0 : index
    %4 = vector.load %arg4[%c0_6, %c0_7] : memref<8x24xbf16, #tpu.memory_space<vmem>>, vector<8x24xbf16>
    %c0_8 = arith.constant 0 : index
    %c0_9 = arith.constant 0 : index
    %5 = vector.load %arg5[%c0_8, %c0_9] : memref<8x1xf32, #tpu.memory_space<vmem>>, vector<8x1xf32>
    %cst = arith.constant 0.000000e+00 : bf16
    %6 = vector.broadcast %cst : bf16 to vector<4x2xbf16>
    %7 = tpu.concatenate %6, %1 in 1 : vector<4x2xbf16>, vector<4x16xbf16> -> vector<4x18xbf16>
    %8 = vector.extract_strided_slice %7 {offsets = [0, 0], sizes = [4, 16], strides = [1, 1]} : vector<4x18xbf16> to vector<4x16xbf16>
    %9 = vector.extract_strided_slice %7 {offsets = [0, 1], sizes = [4, 16], strides = [1, 1]} : vector<4x18xbf16> to vector<4x16xbf16>
    %10 = vector.extract_strided_slice %7 {offsets = [0, 2], sizes = [4, 16], strides = [1, 1]} : vector<4x18xbf16> to vector<4x16xbf16>
    %11 = tpu.concatenate %8, %9, %10 in 0 : vector<4x16xbf16>, vector<4x16xbf16>, vector<4x16xbf16> -> vector<12x16xbf16>
    %cst_10 = arith.constant dense<0.000000e+00> : vector<8x16xf32>
    %12 = tpu.matmul %2, %11, %cst_10 {dimension_numbers = #tpu.dot_dimension_numbers<[1], [0], [0], [1], [0, 0, 1, 1], [], []>} : vector<8x12xbf16>, vector<12x16xbf16>, vector<8x16xf32> -> vector<8x16xf32>
    %13 = vector.broadcast %3 : vector<8x1xf32> to vector<8x16xf32>
    %14 = arith.addf %12, %13 : vector<8x16xf32>
    %cst_11 = arith.constant 0.000000e+00 : f32
    %15 = vector.broadcast %cst_11 : f32 to vector<8x16xf32>
    %16 = arith.maximumf %14, %15 : vector<8x16xf32>
    %17 = arith.truncf %16 : vector<8x16xf32> to vector<8x16xbf16>
    %cst_12 = arith.constant 0.000000e+00 : bf16
    %18 = vector.broadcast %cst_12 : bf16 to vector<8x2xbf16>
    %19 = tpu.concatenate %18, %17 in 1 : vector<8x2xbf16>, vector<8x16xbf16> -> vector<8x18xbf16>
    %20 = vector.extract_strided_slice %19 {offsets = [0, 0], sizes = [8, 16], strides = [1, 1]} : vector<8x18xbf16> to vector<8x16xbf16>
    %21 = vector.extract_strided_slice %19 {offsets = [0, 1], sizes = [8, 16], strides = [1, 1]} : vector<8x18xbf16> to vector<8x16xbf16>
    %22 = vector.extract_strided_slice %19 {offsets = [0, 2], sizes = [8, 16], strides = [1, 1]} : vector<8x18xbf16> to vector<8x16xbf16>
    %23 = tpu.concatenate %20, %21, %22 in 0 : vector<8x16xbf16>, vector<8x16xbf16>, vector<8x16xbf16> -> vector<24x16xbf16>
    %cst_13 = arith.constant dense<0.000000e+00> : vector<8x16xf32>
    %24 = tpu.matmul %4, %23, %cst_13 {dimension_numbers = #tpu.dot_dimension_numbers<[1], [0], [0], [1], [0, 0, 1, 1], [], []>} : vector<8x24xbf16>, vector<24x16xbf16>, vector<8x16xf32> -> vector<8x16xf32>
    %25 = vector.broadcast %5 : vector<8x1xf32> to vector<8x16xf32>
    %26 = arith.addf %24, %25 : vector<8x16xf32>
    %cst_14 = arith.constant 0.000000e+00 : f32
    %27 = vector.broadcast %cst_14 : f32 to vector<8x16xf32>
    %28 = arith.maximumf %26, %27 : vector<8x16xf32>
    %c0_15 = arith.constant 0 : index
    %c0_16 = arith.constant 0 : index
    %29 = vector.load %arg6[%c0_15, %c0_16] : memref<8x4xbf16, #tpu.memory_space<vmem>>, vector<8x4xbf16>
    %c0_17 = arith.constant 0 : index
    %c0_18 = arith.constant 0 : index
    %30 = vector.load %arg7[%c0_17, %c0_18] : memref<8x1xf32, #tpu.memory_space<vmem>>, vector<8x1xf32>
    %cst_19 = arith.constant dense<0.000000e+00> : vector<8x16xf32>
    %31 = tpu.matmul %29, %1, %cst_19 {dimension_numbers = #tpu.dot_dimension_numbers<[1], [0], [0], [1], [0, 0, 1, 1], [], []>} : vector<8x4xbf16>, vector<4x16xbf16>, vector<8x16xf32> -> vector<8x16xf32>
    %32 = vector.broadcast %30 : vector<8x1xf32> to vector<8x16xf32>
    %33 = arith.addf %31, %32 : vector<8x16xf32>
    %34 = arith.addf %28, %33 : vector<8x16xf32>
    %cst_20 = arith.constant 0.000000e+00 : f32
    %35 = vector.broadcast %cst_20 : f32 to vector<8x16xf32>
    %36 = arith.maximumf %34, %35 : vector<8x16xf32>
    %37 = arith.truncf %36 : vector<8x16xf32> to vector<8x16xbf16>
    %c0_21 = arith.constant 0 : index
    %c0_22 = arith.constant 0 : index
    %38 = vector.load %arg8[%c0_21, %c0_22] : memref<8x24xbf16, #tpu.memory_space<vmem>>, vector<8x24xbf16>
    %c0_23 = arith.constant 0 : index
    %c0_24 = arith.constant 0 : index
    %39 = vector.load %arg9[%c0_23, %c0_24] : memref<8x1xf32, #tpu.memory_space<vmem>>, vector<8x1xf32>
    %c0_25 = arith.constant 0 : index
    %c0_26 = arith.constant 0 : index
    %40 = vector.load %arg10[%c0_25, %c0_26] : memref<8x24xbf16, #tpu.memory_space<vmem>>, vector<8x24xbf16>
    %c0_27 = arith.constant 0 : index
    %c0_28 = arith.constant 0 : index
    %41 = vector.load %arg11[%c0_27, %c0_28] : memref<8x1xf32, #tpu.memory_space<vmem>>, vector<8x1xf32>
    %cst_29 = arith.constant 0.000000e+00 : bf16
    %42 = vector.broadcast %cst_29 : bf16 to vector<8x4xbf16>
    %43 = tpu.concatenate %42, %37 in 1 : vector<8x4xbf16>, vector<8x16xbf16> -> vector<8x20xbf16>
    %44 = vector.extract_strided_slice %43 {offsets = [0, 0], sizes = [8, 16], strides = [1, 1]} : vector<8x20xbf16> to vector<8x16xbf16>
    %45 = vector.extract_strided_slice %43 {offsets = [0, 2], sizes = [8, 16], strides = [1, 1]} : vector<8x20xbf16> to vector<8x16xbf16>
    %46 = vector.extract_strided_slice %43 {offsets = [0, 4], sizes = [8, 16], strides = [1, 1]} : vector<8x20xbf16> to vector<8x16xbf16>
    %47 = tpu.concatenate %44, %45, %46 in 0 : vector<8x16xbf16>, vector<8x16xbf16>, vector<8x16xbf16> -> vector<24x16xbf16>
    %cst_30 = arith.constant dense<0.000000e+00> : vector<8x16xf32>
    %48 = tpu.matmul %38, %47, %cst_30 {dimension_numbers = #tpu.dot_dimension_numbers<[1], [0], [0], [1], [0, 0, 1, 1], [], []>} : vector<8x24xbf16>, vector<24x16xbf16>, vector<8x16xf32> -> vector<8x16xf32>
    %49 = vector.broadcast %39 : vector<8x1xf32> to vector<8x16xf32>
    %50 = arith.addf %48, %49 : vector<8x16xf32>
    %cst_31 = arith.constant 0.000000e+00 : f32
    %51 = vector.broadcast %cst_31 : f32 to vector<8x16xf32>
    %52 = arith.maximumf %50, %51 : vector<8x16xf32>
    %53 = arith.truncf %52 : vector<8x16xf32> to vector<8x16xbf16>
    %cst_32 = arith.constant 0.000000e+00 : bf16
    %54 = vector.broadcast %cst_32 : bf16 to vector<8x4xbf16>
    %55 = tpu.concatenate %54, %53 in 1 : vector<8x4xbf16>, vector<8x16xbf16> -> vector<8x20xbf16>
    %56 = vector.extract_strided_slice %55 {offsets = [0, 0], sizes = [8, 16], strides = [1, 1]} : vector<8x20xbf16> to vector<8x16xbf16>
    %57 = vector.extract_strided_slice %55 {offsets = [0, 2], sizes = [8, 16], strides = [1, 1]} : vector<8x20xbf16> to vector<8x16xbf16>
    %58 = vector.extract_strided_slice %55 {offsets = [0, 4], sizes = [8, 16], strides = [1, 1]} : vector<8x20xbf16> to vector<8x16xbf16>
    %59 = tpu.concatenate %56, %57, %58 in 0 : vector<8x16xbf16>, vector<8x16xbf16>, vector<8x16xbf16> -> vector<24x16xbf16>
    %cst_33 = arith.constant dense<0.000000e+00> : vector<8x16xf32>
    %60 = tpu.matmul %40, %59, %cst_33 {dimension_numbers = #tpu.dot_dimension_numbers<[1], [0], [0], [1], [0, 0, 1, 1], [], []>} : vector<8x24xbf16>, vector<24x16xbf16>, vector<8x16xf32> -> vector<8x16xf32>
    %61 = vector.broadcast %41 : vector<8x1xf32> to vector<8x16xf32>
    %62 = arith.addf %60, %61 : vector<8x16xf32>
    %cst_34 = arith.constant 0.000000e+00 : f32
    %63 = vector.broadcast %cst_34 : f32 to vector<8x16xf32>
    %64 = arith.maximumf %62, %63 : vector<8x16xf32>
    %65 = arith.extf %37 : vector<8x16xbf16> to vector<8x16xf32>
    %66 = arith.addf %64, %65 : vector<8x16xf32>
    %cst_35 = arith.constant 0.000000e+00 : f32
    %67 = vector.broadcast %cst_35 : f32 to vector<8x16xf32>
    %68 = arith.maximumf %66, %67 : vector<8x16xf32>
    %c0_36 = arith.constant 0 : index
    %c0_37 = arith.constant 0 : index
    %c0_38 = arith.constant 0 : index
    %69 = vector.load %arg12[%c0_36, %c0_37, %c0_38] : memref<1x8x16xf32, #tpu.memory_space<vmem>>, vector<1x8x16xf32>
    %70 = vector.shape_cast %69 : vector<1x8x16xf32> to vector<8x16xf32>
    %71 = vector.shape_cast %68 : vector<8x16xf32> to vector<1x8x16xf32>
    tpu.vector_store %arg12[%c0_36, %c0_37, %c0_38], %71 {strides = array<i32>} : memref<1x8x16xf32, #tpu.memory_space<vmem>>, vector<1x8x16xf32>,
    return
  }
  func.func @transform_0(%arg0: i32) -> (i32, i32, i32) {
    %c0_i32 = arith.constant 0 : i32
    %c0_i32_0 = arith.constant 0 : i32
    %c0_i32_1 = arith.constant 0 : i32
    return %arg0, %c0_i32, %c0_i32_0 : i32, i32, i32
  }
  func.func @transform_1(%arg0: i32) -> (i32, i32) {
    %c0_i32 = arith.constant 0 : i32
    %c0_i32_0 = arith.constant 0 : i32
    %c0_i32_1 = arith.constant 0 : i32
    return %c0_i32, %c0_i32_0 : i32, i32
  }
  func.func @transform_2(%arg0: i32) -> (i32, i32) {
    %c0_i32 = arith.constant 0 : i32
    %c0_i32_0 = arith.constant 0 : i32
    %c0_i32_1 = arith.constant 0 : i32
    return %c0_i32, %c0_i32_0 : i32, i32
  }
  func.func @transform_3(%arg0: i32) -> (i32, i32) {
    %c0_i32 = arith.constant 0 : i32
    %c0_i32_0 = arith.constant 0 : i32
    %c0_i32_1 = arith.constant 0 : i32
    return %c0_i32, %c0_i32_0 : i32, i32
  }
  func.func @transform_4(%arg0: i32) -> (i32, i32) {
    %c0_i32 = arith.constant 0 : i32
    %c0_i32_0 = arith.constant 0 : i32
    %c0_i32_1 = arith.constant 0 : i32
    return %c0_i32, %c0_i32_0 : i32, i32
  }
  func.func @transform_5(%arg0: i32) -> (i32, i32) {
    %c0_i32 = arith.constant 0 : i32
    %c0_i32_0 = arith.constant 0 : i32
    %c0_i32_1 = arith.constant 0 : i32
    return %c0_i32, %c0_i32_0 : i32, i32
  }
  func.func @transform_6(%arg0: i32) -> (i32, i32) {
    %c0_i32 = arith.constant 0 : i32
    %c0_i32_0 = arith.constant 0 : i32
    %c0_i32_1 = arith.constant 0 : i32
    return %c0_i32, %c0_i32_0 : i32, i32
  }
  func.func @transform_7(%arg0: i32) -> (i32, i32) {
    %c0_i32 = arith.constant 0 : i32
    %c0_i32_0 = arith.constant 0 : i32
    %c0_i32_1 = arith.constant 0 : i32
    return %c0_i32, %c0_i32_0 : i32, i32
  }
  func.func @transform_8(%arg0: i32) -> (i32, i32) {
    %c0_i32 = arith.constant 0 : i32
    %c0_i32_0 = arith.constant 0 : i32
    %c0_i32_1 = arith.constant 0 : i32
    return %c0_i32, %c0_i32_0 : i32, i32
  }
  func.func @transform_9(%arg0: i32) -> (i32, i32) {
    %c0_i32 = arith.constant 0 : i32
    %c0_i32_0 = arith.constant 0 : i32
    %c0_i32_1 = arith.constant 0 : i32
    return %c0_i32, %c0_i32_0 : i32, i32
  }
  func.func @transform_10(%arg0: i32) -> (i32, i32) {
    %c0_i32 = arith.constant 0 : i32
    %c0_i32_0 = arith.constant 0 : i32
    %c0_i32_1 = arith.constant 0 : i32
    return %c0_i32, %c0_i32_0 : i32, i32
  }
  func.func @transform_11(%arg0: i32) -> (i32, i32, i32) {
    %c0_i32 = arith.constant 0 : i32
    %c0_i32_0 = arith.constant 0 : i32
    %c0_i32_1 = arith.constant 0 : i32
    return %arg0, %c0_i32, %c0_i32_0 : i32, i32, i32
  }
}

</mosaic_0001>

<bundles_post_ra>
// kernel: tpu_custom_call.1
= control target key start
LH: loop header
LB: loop body
LE: loop exit
PB: predicated region body
PF: predicated region fallthrough
CT: control target
= control target key end

     0   :  { %s1214_s0 = inlined_call_operand.vmem [shape: bf16[2,4,16], index: 0, kind: input, shape index: {}]   ;;  %s1215_s1 = inlined_call_operand.vmem [shape: bf16[8,12], index: 1, kind: input, shape index: {}]   ;;  %s1216_s2 = inlined_call_operand.vmem [shape: f32[8,1], index: 2, kind: input, shape index: {}]   ;;  %s1217_s3 = inlined_call_operand.vmem [shape: bf16[8,24], index: 3, kind: input, shape index: {}]   ;;  %s1218_s4 = inlined_call_operand.vmem [shape: f32[8,1], index: 4, kind: input, shape index: {}]   ;;  %s1219_s5 = inlined_call_operand.vmem [shape: bf16[8,4], index: 5, kind: input, shape index: {}]   ;;  %s1220_s6 = inlined_call_operand.vmem [shape: f32[8,1], index: 6, kind: input, shape index: {}]   ;;  %s1221_s7 = inlined_call_operand.vmem [shape: bf16[8,24], index: 7, kind: input, shape index: {}]   ;;  %s1222_s8 = inlined_call_operand.vmem [shape: f32[8,1], index: 8, kind: input, shape index: {}]   ;;  %s1223_s9 = inlined_call_operand.vmem [shape: bf16[8,24], index: 9, kind: input, shape index: {}]   ;;  %s1224_s10 = inlined_call_operand.vmem [shape: f32[8,1], index: 10, kind: input, shape index: {}]   ;;  %s1225_s11 = inlined_call_operand.hbm [shape: f32[2,8,16], index: 11, kind: output, shape index: {}]  }
   0x1   :  { %1226 = sst [smem:[#allocation5_spill]] %s1214_s0 }
   0x2   :  { %1227 = sst [smem:[#allocation6_spill]] %s1215_s1 }
   0x3   :  { %16 = vsyncpa [#allocation3], 0 }
   0x4   :  { %18 = vsyncpa [#allocation3 + $0x1], 0  ;;  %s1054_s17 = smov 0   ;;  %s1056_s18 = smov 0  }
   0x5   :  { %s1058_s19 = smov 0   ;;  %s1060_s20 = smov 0  }
   0x6 LB: > { %s1075_s21 = sadd.s32 4294967295, %s982_s20   ;;  %s808_s22 = sadd.s32 4294967294, %s982_s20   ;;  %s982_s20 = sphi %s1060_s20, %s1235_s20   ;;  %s978_s19 = sphi %s1058_s19, %s1234_s19   ;;  %s974_s18 = sphi %s1056_s18, %s1233_s18   ;;  %s970_s17 = sphi %s1054_s17, %s1232_s17  }
   0x7   : > { %s1079_s23 = sadd.s32 1, %s982_s20   ;;  %s267_s24 = sadd.s32 1, %s978_s19 }
   0x8   : > { %s264_s25 = ssub.s32 %s982_s20, %s1079_s23  ;;  %p277_p0 = scmp.ne.s32.totalorder %s978_s19, %s974_s18 }
   0x9   : > { %p265_p1 = scmp.eq.s32.totalorder %s264_s25, 0  ;;  %p278_p2 = scmp.eq.s32.totalorder %s1075_s21, 1 }
   0xa   : > { %p283_p3 = scmp.ne.s32.totalorder %s974_s18, %s970_s17  ;;  %p284_p4 = scmp.eq.s32.totalorder %s808_s22, 1 }
   0xb   : > { %s1090_s26 = scalar_select %p265_p1, %s978_s19, %s267_s24  }
   0xc   : > { %p1092_p5 = por %p278_p2, %p277_p0  ;;  %p1096_p6 = por %p284_p4, %p283_p3 }
   0xd   : > { %p811_p7 = scmp.ge.s32.totalorder %s982_s20, 1  ;;  %p339_p8 = scmp.lt.s32.totalorder %s982_s20, 3 }
   0xf   : > { %p340_p9 = pnand %p811_p7, %p339_p8 }
  0x10   : > { %p378_p10 = scmp.lt.s32.totalorder (!%p340_p9), %s1075_s21, 1  ;;  %s1230_s0 = sld [smem:[#allocation5_spill]] (!%p340_p9) }
  0x11   : > { %343 = sbr.rel (%p340_p9) target bundleno = 1802 (0x70a), region = 64  ;;  %s985_s15 = smov (!%p340_p9), 2  }
  0x12   : > { %s989_s16 = smov (!%p340_p9), 126   ;;  %s990_s22 = smov (!%p340_p9), 127  }
  0x13   : > { %s1231_s1 = sld [smem:[#allocation6_spill]] (!%p340_p9)  ;;  %s992_s12 = smov (!%p340_p9), 124  }
  0x14   : > { %s820_s13 = sshll.u32 (!%p340_p9), %s1075_s21, 7 }
  0x16   : > { %v392_v0 = vlaneseq  ;;  %v984_v1 = vmov 1983009808   ;;  %s379_s29 = scalar_select %p378_p10, %s1075_s21, 1  ;;  %v986_v8 = vmov 0.0   ;;  %vm987_vm0 = vmmov 0   ;;  %v385_v14 = vld [vmem:[%s1216_s2] sm:$0xff] }
  0x17   : > { %v390_v2 = vunpack.c.l.s4 %v984_v1  ;;  %836 = vmatprep.subr.bf16.mxu0 %v986_v8  ;;  %842 = vmatprep.subr.bf16.mxu1 %v986_v8  ;;  %vm398_vm1 = vcmask 15360   ;;  %v988_v9 = vmov 0   ;;  %vm409_vm2 = vcmask 1041408   ;;  %v536_v30 = vld [vmem:[%s1219_s5] sm:$0xf] }
  0x18   : > { %v393_v3 = vshrl.u32 %v392_v0, 7  ;;  %s813_s30 = sshll.u32 %s379_s29, 1  ;;  %838 = vmatprep.mubr.msk.bf16.mxu0 %vm987_vm0, %v986_v8  ;;  %846 = vmatprep.mubr.msk.bf16.mxu1 %vm987_vm0, %v986_v8  ;;  %vm412_vm3 = vcmask 1043456   ;;  %vm424_vm4 = vcmask 1045504   ;;  %vm420_vm5 = vcmask 97280   ;;  %v387_v34 = vld [vmem:[%s1218_s4] sm:$0xff]  ;;  %s747_s29 = scalar_lea.hbm %s1225_s11, %s820_s13 }
  0x19   : > { %v391_v4 = vunpack.c.0.s8 %v390_v2  ;;  %s381_s14 = scalar_lea.vmem %s1230_s0, %s813_s30  ;;  %920 = vset.pattern.permute.xlu1 %v988_v9  ;;  %921 = vset.pattern.permute.xlu0 %v988_v9  ;;  %v384_v20 = vld [vmem:[%s1231_s1] sm:$0xf]  ;;  %vm543_vm6 = vcmask 31744   ;;  %vm488_vm7 = vcmask 195584   ;;  %vm733_vm8 = vcmask 130048   ;;  %s993_s0 = smov [#allocation2]  }
  0x1a   : > { %v383_v6 = vld [vmem:[%s381_s14] sm:$0x3]  ;;  %s926_s21 = sshll.u32 %s993_s0, 4  ;;  %s927_s21 = int_to_ptr.vmem [resolvable:$false] %s926_s21 }
  0x1b   : > { %v394_v5 = vsub.s32 %v391_v4, %v393_v3  ;;  %v548_v29 = vsel %vm409_vm2, %v383_v6, 0  ;;  %v537_v35 = vld [vmem:[%s1220_s6] sm:$0xff] }
  0x1c   : > { %v386_v40 = vld [vmem:[%s1217_s3] sm:$0xf] }
  0x1d   : > { %v395_v7 = vrot.slane %v383_v6, %v394_v5  ;;  %v594_v60 = vld [vmem:[%s1222_s8] sm:$0xff] }
  0x1e   : > { %v593_v1 = vld [vmem:[%s1221_s7] sm:$0xf] }
  0x1f   : > { %396 = vrot.lane.b32.xlu0 %v395_v7, %s985_s15 }
  0x91   : > { %v397_v10 = vpop.permute.xlu0 %396 }
  0x92   : > { %v401_v11 = vsel %vm398_vm1, 0, %v397_v10 }
  0x93   : > { %v403_v12 = vrot.slane %v401_v11, 6  ;;  %v406_v13 = vrot.slane %v401_v11, 4 }
  0x95   : > { %407 = vrot.lane.b32.xlu1 %v406_v13, %s989_s16  ;;  %404 = vrot.lane.b32.xlu0 %v403_v12, %s990_s22 }
  0x99   : > { %417 = vperm.xlu1 %920, %v385_v14   ;;  %v596_v14 = vld [vmem:[%s1224_s10] sm:$0xff] }
 0x107   : > { %v408_v15 = vpop.permute.xlu1 %407  ;;  %v405_v16 = vpop.permute.xlu0 %404 }
 0x108   : > { %v411_v17 = vsel %vm409_vm2, %v401_v11, %v405_v16 }
 0x109   : > { %v414_v18 = vsel %vm412_vm3, %v411_v17, %v408_v15 }
 0x10a   : > { %v425_v19 = vsel %vm424_vm4, %v414_v18, 0 }
 0x10b   : > { %837 = vmatpush3.bf16.msra.mxu0 %v425_v19  ;;  %v595_v19 = vld [vmem:[%s1223_s9] sm:$0xf] }
 0x10c   : > { %850 = vmatprep.subr.bf16.mxu0 %v986_v8 }
 0x10e   : > { %839 = vmatmul.mubr.msk.bf16.vlgmr.msra.gmra.mxu0 %vm420_vm5, %v384_v20 }
 0x10f   : > { %852 = vmatprep.mubr.msk.bf16.mxu0 %vm987_vm0, %v986_v8  ;;  %851 = vmatpush3.bf16.msra.mxu0 %v548_v29 }
 0x110   : > { %864 = vmatprep.subr.bf16.mxu0 %v986_v8 }
 0x114   : > { %v418_v21 = vpop.permute.xlu1 %417 }
 0x116   : > { %853 = vmatmul.mubr.msk.bf16.vlgmr.msra.gmra.mxu0 %vm543_vm6, %v536_v30 }
 0x117   : > { %868 = vmatprep.mubr.msk.bf16.mxu0 %vm987_vm0, %v986_v8 }
 0x1ce   : > { %v461_v22 = vpop.f32.mrf.mxu0 }
 0x1cf   : > { %v462_v23 = vadd.f32 %v461_v22, %v418_v21 }
 0x1d0   : > { %v840_v24 = vpop.f32.mrf.mxu0 }
 0x1d1   : > { %v467_v25 = vmax.f32 %v462_v23, 0.0 }
 0x1d2   : > { %v464_v26 = vpop.f32.mrf.mxu0 }
 0x1d3   : > { %v468_v27 = vpack.c.bf16 %v467_v25, %v467_v25 }
 0x1d4   : > { %v841_v28 = vpop.f32.mrf.mxu0 }
 0x1d5   : > { %470 = vrot.lane.b32.xlu0 %v468_v27, %s985_s15 }
 0x1d6   : > { %v584_v41 = vpop.f32.mrf.mxu0 }
 0x1d8   : > { %v854_v42 = vpop.f32.mrf.mxu0 }
 0x1da   : > { %v587_v43 = vpop.f32.mrf.mxu0 }
 0x1dc   : > { %v855_v44 = vpop.f32.mrf.mxu0 }
 0x247   : > { %v471_v31 = vpop.permute.xlu0 %470 }
 0x248   : > { %v473_v32 = vsel %vm398_vm1, 0, %v471_v31 }
 0x249   : > { %v475_v33 = vrot.slane %v473_v32, 4  ;;  %478 = vrot.lane.b32.xlu1 %v473_v32, %s989_s16 }
 0x24b   : > { %476 = vrot.lane.b32.xlu0 %v475_v33, %s990_s22  ;;  %s991_s22 = smov 4  }
 0x24d   : > { %485 = vperm.xlu1 %920, %v387_v34  }
 0x24f   : > { %540 = vperm.xlu0 %921, %v537_v35  }
 0x2bb   : > { %v479_v36 = vpop.permute.xlu1 %478 }
 0x2bc   : > { %v493_v37 = vsel %vm412_vm3, %v479_v36, 0 }
 0x2bd   : > { %843 = vmatpush3.bf16.msra.mxu1 %v493_v37  ;;  %v477_v38 = vpop.permute.xlu0 %476 }
 0x2be   : > { %844 = vmatprep.subr.bf16.mxu1 %v986_v8  ;;  %v481_v39 = vsel %vm412_vm3, %v473_v32, %v477_v38 }
 0x2c1   : > { %845 = vmatpush3.bf16.msra.mxu1 %v481_v39 }
 0x2c2   : > { %856 = vmatprep.subr.bf16.mxu1 %v986_v8 }
 0x2c4   : > { %847 = vmatmul.mubr.msk.bf16.vlgmr.msra.gmra.mxu1 %vm488_vm7, %v386_v40 }
 0x2c5   : > { %860 = vmatprep.mubr.msk.bf16.mxu1 %vm987_vm0, %v986_v8 }
 0x2c8   : > { %v486_v46 = vpop.permute.xlu1 %485 }
 0x2ca   : > { %v541_v45 = vpop.permute.xlu0 %540 }
 0x2cb   : > { %v585_v49 = vadd.f32 %v584_v41, %v541_v45 }
 0x384   : > { %v529_v47 = vpop.f32.mrf.mxu1 }
 0x385   : > { %v530_v48 = vadd.f32 %v529_v47, %v486_v46 }
 0x386   : > { %v848_v50 = vpop.f32.mrf.mxu1 }
 0x387   : > { %v535_v51 = vmax.f32 %v530_v48, 0.0 }
 0x388   : > { %v532_v52 = vpop.f32.mrf.mxu1 }
 0x389   : > { %v590_v53 = vadd.f32 %v585_v49, %v535_v51 }
 0x38a   : > { %v849_v54 = vpop.f32.mrf.mxu1 }
 0x38b   : > { %v591_v55 = vmax.f32 %v590_v53, 0.0 }
 0x38d   : > { %v592_v56 = vpack.c.bf16 %v591_v55, %v591_v55 }
 0x38f   : > { %598 = vrot.lane.b32.xlu1 %v592_v56, %s991_s22  ;;  %v730_v25 = vunpack.c.l.bf16 %v592_v56 }
 0x401   : > { %v599_v57 = vpop.permute.xlu1 %598 }
 0x402   : > { %v601_v58 = vsel %vm543_vm6, 0, %v599_v57 }
 0x403   : > { %v603_v59 = vrot.slane %v601_v58, 4  ;;  %606 = vrot.lane.b32.xlu1 %v601_v58, %s992_s12 }
 0x405   : > { %604 = vrot.lane.b32.xlu0 %v603_v59, %s989_s16 }
 0x407   : > { %613 = vperm.xlu1 %920, %v594_v60  }
 0x475   : > { %v607_v61 = vpop.permute.xlu1 %606 }
 0x476   : > { %v620_v62 = vsel %vm412_vm3, %v607_v61, 0 }
 0x477   : > { %857 = vmatpush3.bf16.msra.mxu1 %v620_v62  ;;  %v605_v63 = vpop.permute.xlu0 %604 }
 0x478   : > { %858 = vmatprep.subr.bf16.mxu1 %v986_v8  ;;  %v609_v0 = vsel %vm412_vm3, %v601_v58, %v605_v63 }
 0x47b   : > { %859 = vmatpush3.bf16.msra.mxu1 %v609_v0 }
 0x47e   : > { %861 = vmatmul.mubr.msk.bf16.vlgmr.msra.gmra.mxu1 %vm488_vm7, %v593_v1 }
 0x482   : > { %v614_v2 = vpop.permute.xlu1 %613 }
 0x53e   : > { %v656_v3 = vpop.f32.mrf.mxu1 }
 0x53f   : > { %v657_v4 = vadd.f32 %v656_v3, %v614_v2 }
 0x540   : > { %v862_v5 = vpop.f32.mrf.mxu1 }
 0x541   : > { %v662_v6 = vmax.f32 %v657_v4, 0.0 }
 0x542   : > { %v659_v7 = vpop.f32.mrf.mxu1 }
 0x543   : > { %v663_v9 = vpack.c.bf16 %v662_v6, %v662_v6 }
 0x544   : > { %v863_v10 = vpop.f32.mrf.mxu1 }
 0x545   : > { %665 = vrot.lane.b32.xlu0 %v663_v9, %s991_s22 }
 0x5b7   : > { %v666_v11 = vpop.permute.xlu0 %665 }
 0x5b8   : > { %v668_v12 = vsel %vm543_vm6, 0, %v666_v11 }
 0x5b9   : > { %v670_v13 = vrot.slane %v668_v12, 4  ;;  %673 = vrot.lane.b32.xlu1 %v668_v12, %s992_s12  ;;  %s375_s12 = sand.u32 1, %s974_s18  }
 0x5ba   : > { %s736_s30 = scalar_lea.sflag [#allocation3], %s375_s12 }
 0x5bb   : > { %671 = vrot.lane.b32.xlu0 %v670_v13, %s989_s16  ;;  %s812_s16 = sshll.u32 %s375_s12, 3 }
 0x5bc   : > { %s377_s14 = scalar_lea.vmem [#allocation2], %s812_s16  ;;  %s928_s16 = scalar_lea.vmem %s927_s21, 256 }
 0x5bd   : > { %680 = vperm.xlu1 %920, %v596_v14   ;;  %s749_s15 = sshll.u32 %s377_s14, 4  ;;  %s750_s15 = int_to_ptr.vmem [resolvable:$true] %s749_s15 }
 0x5be   : > { %s922_s22 = scalar_lea.vmem %s750_s15, 128  ;;  %p929_p0 = scmp.lt.s32.totalorder %s750_s15, %s927_s21 }
 0x5bf   : > { %p923_p11 = scmp.ne.s32.totalorder %s750_s15, %s922_s22  ;;  %p930_p1 = scmp.lt.s32.totalorder %s928_s16, %s922_s22 }
 0x5c1   : > { %p924_p12 = pnand %p923_p11, %p1092_p5  ;;  %p931_p2 = por %p930_p1, %p929_p0 }
 0x5c3   : > { %p925_p13 = pneg %p924_p12 }
 0x5c5   : > { %p932_p3 = pnand %p931_p2, %p925_p13 }
 0x62b   : > { %v674_v15 = vpop.permute.xlu1 %673 }
 0x62c   : > { %v687_v16 = vsel %vm412_vm3, %v674_v15, 0 }
 0x62d   : > { %865 = vmatpush3.bf16.msra.mxu0 %v687_v16  ;;  %v672_v17 = vpop.permute.xlu0 %671 }
 0x62e   : > { %866 = vmatprep.subr.bf16.mxu0 %v986_v8  ;;  %v676_v18 = vsel %vm412_vm3, %v668_v12, %v672_v17 }
 0x631   : > { %867 = vmatpush3.bf16.msra.mxu0 %v676_v18 }
 0x634   : > { %869 = vmatmul.mubr.msk.bf16.vlgmr.msra.gmra.mxu0 %vm488_vm7, %v595_v19 }
 0x638   : > { %v681_v20 = vpop.permute.xlu1 %680 }
 0x6f4   : > { %v723_v21 = vpop.f32.mrf.mxu0 }
 0x6f5   : > { %v724_v22 = vadd.f32 %v723_v21, %v681_v20 }
 0x6f6   : > { %v870_v23 = vpop.f32.mrf.mxu0 }
 0x6f7   : > { %v729_v24 = vmax.f32 %v724_v22, 0.0 }
 0x6f8   : > { %v726_v26 = vpop.f32.mrf.mxu0 }
 0x6f9   : > { %v731_v8 = vadd.f32 %v730_v25, %v729_v24 }
 0x6fa   : > { %v871_v27 = vpop.f32.mrf.mxu0 }
 0x6fb   : > { %v732_v28 = vmax.f32 %v731_v8, 0.0 }
 0x6fd   : > { %734 = vst.msk [vmem:[%s377_s14] sm:$0xff] %vm733_vm8, %v732_v28 }
 0x6fe   : > { %935 = shalt.err (!%p932_p3)
}
 0x6ff   : > { %s936_s1 = scalar_lea.hbm %s747_s29, 128  ;;  %s940_s14 = scalar_lea.hbm %s1225_s11, 256 }
 0x700   : > { %p937_p4 = scmp.ne.s32.totalorder %s747_s29, %s936_s1  ;;  %p941_p9 = scmp.lt.s32.totalorder %s747_s29, %s1225_s11 }
 0x701   : > { %p942_p10 = scmp.lt.s32.totalorder %s940_s14, %s936_s1 }
 0x702   : > { %p938_p7 = pnand %p937_p4, %p1092_p5 }
 0x703   : > { %p943_p11 = por %p942_p10, %p941_p9 }
 0x704   : > { %p939_p8 = pneg %p938_p7 }
 0x706   : > { %p944_p12 = pnand %p943_p11, %p939_p8 }
 0x708   : > { %947 = shalt.err (!%p944_p12)
}
 0x709   : > { %872 = dma.vmem_to_hbm [thread:$0]  (%p1092_p5), %s750_s15, 128, %s747_s29, %s736_s30  }
 0x70a PF: > { %p878_p13 = scmp.ge.s32.totalorder %s982_s20, 2  ;;  %s761_s0 = sand.u32 1, %s970_s17  }
 0x70b   : > { %s762_s22 = scalar_lea.sflag [#allocation3], %s761_s0 }
 0x70c   : > { %p875_p0 = pnand %p878_p13, %p1096_p6 }
 0x70e   : > { %p876_p1 = pneg %p875_p0 }
 0x710   : > { %965 = dma.done.wait (%p876_p1), %s762_s22, 128  }
 0x711   : > { %967 = vsyncadd (%p876_p1), %s762_s22, 4294967168  ;;  %p21_p2 = scmp.ge.s32.totalorder %s1079_s23, 4   ;;  %s1232_s17 = smov %s974_s18 }
 0x712   : > { %s1233_s18 = smov %s978_s19  ;;  %s1234_s19 = smov %s1090_s26 }
 0x713   : > { %s1235_s20 = smov %s1079_s23  ;;  %23 = sbr.rel (!%p21_p2) target bundleno = 6 (0x6), region = 99 }
 0x718   :  { %767 = vsyncpa [#allocation3], 1 }
 0x719   :  { %769 = vsyncpa [#allocation3 + $0x1], 1 }

</bundles_post_ra>
